<compile_context>
chip_gen: v6e
topology: v6e:2x2x1
jax: 0.10.0
libtpu: 0.0.40
codegen_flags: <defaults>
</compile_context>

<pallas_src>
import functools

import jax
import jax.numpy as jnp
from jax.experimental import pallas as pl
from jax.experimental.pallas import tpu as pltpu


def _round_up(x, m):
    return (x + m - 1) // m * m


def _n_tiling(n):
    np_ = _round_up(n, 128)
    tn = 256 if np_ % 256 == 0 else 128
    return np_, tn


def _k_tiling(k):
    kp = _round_up(k, 128)
    if kp <= 512:
        return kp, kp          # single exact K block for small K (3x3 convs)
    kp = _round_up(k, 256)
    return kp, 256


def _m_tiling(m):
    tm = min(256, _round_up(m, 8))
    return _round_up(m, tm), tm


# ---------------------------------------------------------------------------
# Pallas tiled matmul + bias kernel (conv hot path, bf16 operands, f32 acc)
# ---------------------------------------------------------------------------
def _matmul_bias_kernel(a_ref, b_ref, bias_ref, o_ref, acc_ref):
    @pl.when(pl.program_id(2) == 0)
    def _():
        acc_ref[...] = jnp.broadcast_to(
            bias_ref[...].astype(jnp.float32), acc_ref.shape)

    acc_ref[...] += jnp.dot(a_ref[...], b_ref[...],
                            preferred_element_type=jnp.float32)

    @pl.when(pl.program_id(2) == pl.num_programs(2) - 1)
    def _():
        o_ref[...] = acc_ref[...].astype(o_ref.dtype)


def matmul_bias_padded(a_p, b_p, bias_p, *, tm, tn, tk):
    """a_p: (Mp, Kp) bf16, b_p: (Kp, Np) bf16, bias_p: (1, Np) f32 -> (Mp, Np) f32."""
    Mp, Kp = a_p.shape
    Kp2, Np = b_p.shape
    assert Kp == Kp2 and Mp % tm == 0 and Np % tn == 0 and Kp % tk == 0

    grid = (Mp // tm, Np // tn, Kp // tk)
    return pl.pallas_call(
        _matmul_bias_kernel,
        out_shape=jax.ShapeDtypeStruct((Mp, Np), jnp.float32),
        grid_spec=pltpu.PrefetchScalarGridSpec(
            num_scalar_prefetch=0,
            grid=grid,
            in_specs=[
                pl.BlockSpec((tm, tk), lambda i, j, k: (i, k)),
                pl.BlockSpec((tk, tn), lambda i, j, k: (k, j)),
                pl.BlockSpec((1, tn), lambda i, j, k: (0, j)),
            ],
            out_specs=pl.BlockSpec((tm, tn), lambda i, j, k: (i, j)),
            scratch_shapes=[pltpu.VMEM((tm, tn), jnp.float32)],
        ),
        compiler_params=pltpu.CompilerParams(
            dimension_semantics=("parallel", "parallel", "arbitrary"),
            vmem_limit_bytes=48 * 1024 * 1024,
        ),
    )(a_p, b_p, bias_p)


# ---------------------------------------------------------------------------
# Pallas BatchNorm (batch statistics) + ReLU, tiled over M, lane-dense channels
# ---------------------------------------------------------------------------
def _bn_stats_kernel(x_ref, gamma_ref, beta_ref, scale_ref, shift_ref,
                     sum_ref, sq_ref, *, m_real, tm, eps):
    i = pl.program_id(0)

    @pl.when(i == 0)
    def _():
        sum_ref[...] = jnp.zeros_like(sum_ref)
        sq_ref[...] = jnp.zeros_like(sq_ref)

    x = x_ref[...]
    row = jax.lax.broadcasted_iota(jnp.int32, x.shape, 0) + i * tm
    xm = jnp.where(row < m_real, x, 0.0)          # mask M-padding rows
    sum_ref[...] += jnp.sum(xm, axis=0, keepdims=True)
    sq_ref[...] += jnp.sum(xm * xm, axis=0, keepdims=True)

    @pl.when(i == pl.num_programs(0) - 1)
    def _():
        inv_m = jnp.float32(1.0 / m_real)
        mean = sum_ref[...] * inv_m
        var = jnp.maximum(sq_ref[...] * inv_m - mean * mean, 0.0)  # biased var
        scale = gamma_ref[...] * jax.lax.rsqrt(var + eps)
        scale_ref[...] = scale
        shift_ref[...] = beta_ref[...] - mean * scale


def _bn_relu_apply_kernel(x_ref, scale_ref, shift_ref, o_ref):
    o_ref[...] = jnp.maximum(x_ref[...] * scale_ref[...] + shift_ref[...], 0.0)


def batchnorm_relu_padded(x_p, gamma_p, beta_p, *, m_real, tm, eps=1e-5):
    """x_p: (Mp, Cp) f32, gamma_p/beta_p: (1, Cp) f32 -> (Mp, Cp) f32.

    Training-mode BatchNorm2d (statistics over the m_real valid rows of each
    channel) fused with ReLU, on the padded lane-dense layout."""
    Mp, Cp = x_p.shape
    assert Mp % tm == 0
    grid = (Mp // tm,)

    scale, shift = pl.pallas_call(
        functools.partial(_bn_stats_kernel, m_real=m_real, tm=tm, eps=eps),
        out_shape=(jax.ShapeDtypeStruct((1, Cp), jnp.float32),
                   jax.ShapeDtypeStruct((1, Cp), jnp.float32)),
        grid_spec=pltpu.PrefetchScalarGridSpec(
            num_scalar_prefetch=0,
            grid=grid,
            in_specs=[
                pl.BlockSpec((tm, Cp), lambda i: (i, 0)),
                pl.BlockSpec((1, Cp), lambda i: (0, 0)),
                pl.BlockSpec((1, Cp), lambda i: (0, 0)),
            ],
            out_specs=(pl.BlockSpec((1, Cp), lambda i: (0, 0)),
                       pl.BlockSpec((1, Cp), lambda i: (0, 0))),
            scratch_shapes=[pltpu.VMEM((1, Cp), jnp.float32),
                            pltpu.VMEM((1, Cp), jnp.float32)],
        ),
        compiler_params=pltpu.CompilerParams(
            dimension_semantics=("arbitrary",)),
    )(x_p, gamma_p, beta_p)

    return pl.pallas_call(
        _bn_relu_apply_kernel,
        out_shape=jax.ShapeDtypeStruct((Mp, Cp), jnp.float32),
        grid_spec=pltpu.PrefetchScalarGridSpec(
            num_scalar_prefetch=0,
            grid=grid,
            in_specs=[
                pl.BlockSpec((tm, Cp), lambda i: (i, 0)),
                pl.BlockSpec((1, Cp), lambda i: (0, 0)),
                pl.BlockSpec((1, Cp), lambda i: (0, 0)),
            ],
            out_specs=pl.BlockSpec((tm, Cp), lambda i: (i, 0)),
        ),
        compiler_params=pltpu.CompilerParams(
            dimension_semantics=("parallel",)),
    )(x_p, scale, shift)


# ---------------------------------------------------------------------------
# Layout glue: nearest upsample + im2col (pure data movement, no compute)
# ---------------------------------------------------------------------------
def upsample_nearest_2x(x_nhwc):
    N, H, W, C = x_nhwc.shape
    x = jnp.broadcast_to(x_nhwc[:, :, None, :, None, :], (N, H, 2, W, 2, C))
    return x.reshape(N, 2 * H, 2 * W, C)


def _im2col_3x3_s1(x_pad, Ho, Wo):
    # TODO(synk): fuse the patch extraction (and the nearest upsample) into the
    # matmul kernel via shifted-view accumulation to avoid the 9x (and 4x
    # upsample) HBM duplication at production resolutions.
    cols = []
    for di in range(3):
        for dj in range(3):
            cols.append(x_pad[:, di:di + Ho, dj:dj + Wo, :])
    patches = jnp.concatenate(cols, axis=-1)                 # (N, Ho, Wo, 9*C)
    N, C = x_pad.shape[0], x_pad.shape[3]
    return patches.reshape(N * Ho * Wo, 9 * C)


# ---------------------------------------------------------------------------
# up_conv parameters + forward
# ---------------------------------------------------------------------------
def init_up_conv_params(key, ch_in, ch_out):
    """Random conv weights + fresh BatchNorm params, pre-packed once for the
    TPU matmul: (kh, kw, cin)->K reshape, K/N tile padding, bf16 weight cast."""
    k1, k2 = jax.random.split(key)
    w = jax.random.normal(k1, (ch_out, ch_in, 3, 3), jnp.float32) * 0.1
    b = jax.random.normal(k2, (ch_out,), jnp.float32) * 0.1
    gamma = jnp.ones((ch_out,), jnp.float32)
    beta = jnp.zeros((ch_out,), jnp.float32)

    K = 9 * ch_in
    Kp, _ = _k_tiling(K)
    Np, _ = _n_tiling(ch_out)

    w_mat = jnp.transpose(w, (2, 3, 1, 0)).reshape(K, ch_out)   # (kh,kw,cin) x cout
    w_mat = jnp.pad(w_mat, ((0, Kp - K), (0, Np - ch_out))).astype(jnp.bfloat16)
    bias_p = jnp.pad(b, (0, Np - ch_out)).reshape(1, Np)
    gamma_p = jnp.pad(gamma, (0, Np - ch_out)).reshape(1, Np)
    beta_p = jnp.pad(beta, (0, Np - ch_out)).reshape(1, Np)

    return {"w_mat": w_mat, "bias": bias_p, "gamma": gamma_p, "beta": beta_p}


def up_conv_forward(params, x_nchw, *, ch_out):
    x = jnp.transpose(x_nchw, (0, 2, 3, 1)).astype(jnp.float32)   # NCHW -> NHWC
    x = upsample_nearest_2x(x)                                    # nn.Upsample(2)
    N, Ho, Wo, _ = x.shape

    # Conv2d(3x3, stride 1, padding 1, bias=True) via im2col + Pallas matmul.
    x_pad = jnp.pad(x, ((0, 0), (1, 1), (1, 1), (0, 0)))
    patches = _im2col_3x3_s1(x_pad, Ho, Wo)                       # (M, K) f32
    M, K = patches.shape

    Kp, tk = _k_tiling(K)
    Np, tn = _n_tiling(ch_out)
    Mp, tm = _m_tiling(M)

    a_p = jnp.pad(patches.astype(jnp.bfloat16), ((0, Mp - M), (0, Kp - K)))
    y_p = matmul_bias_padded(a_p, params["w_mat"], params["bias"],
                             tm=tm, tn=tn, tk=tk)                 # (Mp, Np) f32

    # BatchNorm2d (batch statistics) + ReLU, fused, lane-dense padded layout.
    y_p = batchnorm_relu_padded(y_p, params["gamma"], params["beta"],
                                m_real=M, tm=tm)

    y = y_p[:M, :ch_out].reshape(N, Ho, Wo, ch_out)
    return jnp.transpose(y, (0, 3, 1, 2))                         # NHWC -> NCHW


if __name__ == "__main__":
    key = jax.random.PRNGKey(0)
    k_param, k_x = jax.random.split(key)

    ch_in, ch_out = 4, 8
    batch, spatial = 2, 16

    params = init_up_conv_params(k_param, ch_in, ch_out)
    x = jax.random.normal(k_x, (batch, ch_in, spatial, spatial), jnp.float32)

    fwd = jax.jit(functools.partial(up_conv_forward, ch_out=ch_out))
    out = fwd(params, x)
    jax.block_until_ready(out)

    assert out.shape == (batch, ch_out, 2 * spatial, 2 * spatial), out.shape
    assert bool(jnp.all(jnp.isfinite(out)))
    assert bool(jnp.min(out) >= 0.0)  # ReLU output
    print("KERNEL_OK")
</pallas_src>

<mosaic_0001>
module attributes {stable_mosaic.version = 11 : i64} {
  func.func @_matmul_bias_kernel(%arg0: i32, %arg1: i32, %arg2: i32, %arg3: memref<256x128xbf16, #tpu.memory_space<vmem>>, %arg4: memref<128x128xbf16, #tpu.memory_space<vmem>>, %arg5: memref<1x128xf32, #tpu.memory_space<vmem>>, %arg6: memref<256x128xf32, #tpu.memory_space<vmem>>, %arg7: memref<256x128xf32, #tpu.memory_space<vmem>>) attributes {dimension_semantics = [#tpu.dimension_semantics<parallel>, #tpu.dimension_semantics<parallel>, #tpu.dimension_semantics<arbitrary>], iteration_bounds = array<i64: 8, 1, 1>, scalar_prefetch = 0 : i64, scratch_operands = 1 : i64, tpu.core_type = #tpu.core_type<tc>, window_params = [{transform_indices = @transform_0, window_bounds = array<i64: 256, 128>}, {transform_indices = @transform_1, window_bounds = array<i64: 128, 128>}, {transform_indices = @transform_2, window_bounds = array<i64: 1, 128>}, {transform_indices = @transform_3, window_bounds = array<i64: 256, 128>}]} {
    %c0_i32 = arith.constant 0 : i32
    %0 = arith.cmpi eq, %arg2, %c0_i32 : i32
    %1 = arith.extui %0 : i1 to i32
    %c0_i32_0 = arith.constant 0 : i32
    %2 = arith.cmpi ne, %1, %c0_i32_0 : i32
    scf.if %2 {
      %c0_10 = arith.constant 0 : index
      %c0_11 = arith.constant 0 : index
      %12 = vector.load %arg5[%c0_10, %c0_11] : memref<1x128xf32, #tpu.memory_space<vmem>>, vector<1x128xf32>
      %13 = vector.shape_cast %12 : vector<1x128xf32> to vector<1x128xf32>
      %14 = vector.broadcast %13 : vector<1x128xf32> to vector<256x128xf32>
      %c0_12 = arith.constant 0 : index
      %c0_13 = arith.constant 0 : index
      %15 = vector.load %arg7[%c0_12, %c0_13] : memref<256x128xf32, #tpu.memory_space<vmem>>, vector<256x128xf32>
      tpu.vector_store %arg7[%c0_12, %c0_13], %14 {strides = array<i32>} : memref<256x128xf32, #tpu.memory_space<vmem>>, vector<256x128xf32>,
    } else {
    }
    %c0 = arith.constant 0 : index
    %c0_1 = arith.constant 0 : index
    %3 = vector.load %arg7[%c0, %c0_1] : memref<256x128xf32, #tpu.memory_space<vmem>>, vector<256x128xf32>
    %c0_2 = arith.constant 0 : index
    %c0_3 = arith.constant 0 : index
    %4 = vector.load %arg3[%c0_2, %c0_3] : memref<256x128xbf16, #tpu.memory_space<vmem>>, vector<256x128xbf16>
    %c0_4 = arith.constant 0 : index
    %c0_5 = arith.constant 0 : index
    %5 = vector.load %arg4[%c0_4, %c0_5] : memref<128x128xbf16, #tpu.memory_space<vmem>>, vector<128x128xbf16>
    %cst = arith.constant dense<0.000000e+00> : vector<256x128xf32>
    %6 = tpu.matmul %4, %5, %cst {dimension_numbers = #tpu.dot_dimension_numbers<[1], [0], [0], [1], [0, 0, 1, 1], [], []>} : vector<256x128xbf16>, vector<128x128xbf16>, vector<256x128xf32> -> vector<256x128xf32>
    %7 = arith.addf %3, %6 : vector<256x128xf32>
    %c0_6 = arith.constant 0 : index
    %c0_7 = arith.constant 0 : index
    %8 = vector.load %arg7[%c0_6, %c0_7] : memref<256x128xf32, #tpu.memory_space<vmem>>, vector<256x128xf32>
    tpu.vector_store %arg7[%c0_6, %c0_7], %7 {strides = array<i32>} : memref<256x128xf32, #tpu.memory_space<vmem>>, vector<256x128xf32>,
    %c0_i32_8 = arith.constant 0 : i32
    %9 = arith.cmpi eq, %arg2, %c0_i32_8 : i32
    %10 = arith.extui %9 : i1 to i32
    %c0_i32_9 = arith.constant 0 : i32
    %11 = arith.cmpi ne, %10, %c0_i32_9 : i32
    scf.if %11 {
      %c0_10 = arith.constant 0 : index
      %c0_11 = arith.constant 0 : index
      %12 = vector.load %arg7[%c0_10, %c0_11] : memref<256x128xf32, #tpu.memory_space<vmem>>, vector<256x128xf32>
      %c0_12 = arith.constant 0 : index
      %c0_13 = arith.constant 0 : index
      %13 = vector.load %arg6[%c0_12, %c0_13] : memref<256x128xf32, #tpu.memory_space<vmem>>, vector<256x128xf32>
      tpu.vector_store %arg6[%c0_12, %c0_13], %12 {strides = array<i32>} : memref<256x128xf32, #tpu.memory_space<vmem>>, vector<256x128xf32>,
    } else {
    }
    return
  }
  func.func @transform_0(%arg0: i32, %arg1: i32, %arg2: i32) -> (i32, i32) {
    %c0_i32 = arith.constant 0 : i32
    return %arg0, %arg2 : i32, i32
  }
  func.func @transform_1(%arg0: i32, %arg1: i32, %arg2: i32) -> (i32, i32) {
    %c0_i32 = arith.constant 0 : i32
    return %arg2, %arg1 : i32, i32
  }
  func.func @transform_2(%arg0: i32, %arg1: i32, %arg2: i32) -> (i32, i32) {
    %c0_i32 = arith.constant 0 : i32
    %c0_i32_0 = arith.constant 0 : i32
    return %c0_i32, %arg1 : i32, i32
  }
  func.func @transform_3(%arg0: i32, %arg1: i32, %arg2: i32) -> (i32, i32) {
    %c0_i32 = arith.constant 0 : i32
    return %arg0, %arg1 : i32, i32
  }
}

module attributes {stable_mosaic.version = 11 : i64} {
  func.func @_bn_stats_kernel(%arg0: i32, %arg1: memref<256x128xf32, #tpu.memory_space<vmem>>, %arg2: memref<1x128xf32, #tpu.memory_space<vmem>>, %arg3: memref<1x128xf32, #tpu.memory_space<vmem>>, %arg4: memref<1x128xf32, #tpu.memory_space<vmem>>, %arg5: memref<1x128xf32, #tpu.memory_space<vmem>>, %arg6: memref<1x128xf32, #tpu.memory_space<vmem>>, %arg7: memref<1x128xf32, #tpu.memory_space<vmem>>) attributes {dimension_semantics = [#tpu.dimension_semantics<arbitrary>], iteration_bounds = array<i64: 8>, scalar_prefetch = 0 : i64, scratch_operands = 2 : i64, tpu.core_type = #tpu.core_type<tc>, window_params = [{transform_indices = @transform_0, window_bounds = array<i64: 256, 128>}, {pipeline_mode = #tpu.pipeline_mode<synchronous>, transform_indices = @transform_1, window_bounds = array<i64: 1, 128>}, {pipeline_mode = #tpu.pipeline_mode<synchronous>, transform_indices = @transform_2, window_bounds = array<i64: 1, 128>}, {pipeline_mode = #tpu.pipeline_mode<synchronous>, transform_indices = @transform_3, window_bounds = array<i64: 1, 128>}, {pipeline_mode = #tpu.pipeline_mode<synchronous>, transform_indices = @transform_4, window_bounds = array<i64: 1, 128>}]} {
    %c0_i32 = arith.constant 0 : i32
    %0 = arith.cmpi eq, %arg0, %c0_i32 : i32
    %1 = arith.extui %0 : i1 to i32
    %c0_i32_0 = arith.constant 0 : i32
    %2 = arith.cmpi ne, %1, %c0_i32_0 : i32
    scf.if %2 {
      %cst_13 = arith.constant 0.000000e+00 : f32
      %26 = vector.broadcast %cst_13 : f32 to vector<1x128xf32>
      %c0_14 = arith.constant 0 : index
      %c0_15 = arith.constant 0 : index
      %27 = vector.load %arg6[%c0_14, %c0_15] : memref<1x128xf32, #tpu.memory_space<vmem>>, vector<1x128xf32>
      tpu.vector_store %arg6[%c0_14, %c0_15], %26 {strides = array<i32>} : memref<1x128xf32, #tpu.memory_space<vmem>>, vector<1x128xf32>,
      %cst_16 = arith.constant 0.000000e+00 : f32
      %28 = vector.broadcast %cst_16 : f32 to vector<1x128xf32>
      %c0_17 = arith.constant 0 : index
      %c0_18 = arith.constant 0 : index
      %29 = vector.load %arg7[%c0_17, %c0_18] : memref<1x128xf32, #tpu.memory_space<vmem>>, vector<1x128xf32>
      tpu.vector_store %arg7[%c0_17, %c0_18], %28 {strides = array<i32>} : memref<1x128xf32, #tpu.memory_space<vmem>>, vector<1x128xf32>,
    } else {
    }
    %c0 = arith.constant 0 : index
    %c0_1 = arith.constant 0 : index
    %3 = vector.load %arg1[%c0, %c0_1] : memref<256x128xf32, #tpu.memory_space<vmem>>, vector<256x128xf32>
    %4 = tpu.iota {dimensions = array<i32: 0>} : vector<256x128xi32>
    %c256_i32 = arith.constant 256 : i32
    %5 = arith.muli %arg0, %c256_i32 : i32
    %6 = vector.broadcast %5 : i32 to vector<256x128xi32>
    %7 = arith.addi %4, %6 : vector<256x128xi32>
    %c2048_i32 = arith.constant 2048 : i32
    %8 = vector.broadcast %c2048_i32 : i32 to vector<256x128xi32>
    %9 = arith.cmpi slt, %7, %8 : vector<256x128xi32>
    %cst = arith.constant 0.000000e+00 : f32
    %10 = vector.broadcast %cst : f32 to vector<256x128xf32>
    %11 = arith.select %9, %3, %10 : vector<256x128xi1>, vector<256x128xf32>
    %c0_2 = arith.constant 0 : index
    %c0_3 = arith.constant 0 : index
    %12 = vector.load %arg6[%c0_2, %c0_3] : memref<1x128xf32, #tpu.memory_space<vmem>>, vector<1x128xf32>
    %cst_4 = arith.constant dense<0.000000e+00> : vector<128xf32>
    %13 = vector.multi_reduction <add>, %11, %cst_4 [0] : vector<256x128xf32> to vector<128xf32>
    %14 = vector.shape_cast %13 : vector<128xf32> to vector<1x128xf32>
    %15 = arith.addf %12, %14 : vector<1x128xf32>
    %c0_5 = arith.constant 0 : index
    %c0_6 = arith.constant 0 : index
    %16 = vector.load %arg6[%c0_5, %c0_6] : memref<1x128xf32, #tpu.memory_space<vmem>>, vector<1x128xf32>
    tpu.vector_store %arg6[%c0_5, %c0_6], %15 {strides = array<i32>} : memref<1x128xf32, #tpu.memory_space<vmem>>, vector<1x128xf32>,
    %c0_7 = arith.constant 0 : index
    %c0_8 = arith.constant 0 : index
    %17 = vector.load %arg7[%c0_7, %c0_8] : memref<1x128xf32, #tpu.memory_space<vmem>>, vector<1x128xf32>
    %18 = arith.mulf %11, %11 : vector<256x128xf32>
    %cst_9 = arith.constant dense<0.000000e+00> : vector<128xf32>
    %19 = vector.multi_reduction <add>, %18, %cst_9 [0] : vector<256x128xf32> to vector<128xf32>
    %20 = vector.shape_cast %19 : vector<128xf32> to vector<1x128xf32>
    %21 = arith.addf %17, %20 : vector<1x128xf32>
    %c0_10 = arith.constant 0 : index
    %c0_11 = arith.constant 0 : index
    %22 = vector.load %arg7[%c0_10, %c0_11] : memref<1x128xf32, #tpu.memory_space<vmem>>, vector<1x128xf32>
    tpu.vector_store %arg7[%c0_10, %c0_11], %21 {strides = array<i32>} : memref<1x128xf32, #tpu.memory_space<vmem>>, vector<1x128xf32>,
    %c7_i32 = arith.constant 7 : i32
    %23 = arith.cmpi eq, %arg0, %c7_i32 : i32
    %24 = arith.extui %23 : i1 to i32
    %c0_i32_12 = arith.constant 0 : i32
    %25 = arith.cmpi ne, %24, %c0_i32_12 : i32
    scf.if %25 {
      %c0_13 = arith.constant 0 : index
      %c0_14 = arith.constant 0 : index
      %26 = vector.load %arg6[%c0_13, %c0_14] : memref<1x128xf32, #tpu.memory_space<vmem>>, vector<1x128xf32>
      %cst_15 = arith.constant 4.8828125E-4 : f32
      %27 = vector.broadcast %cst_15 : f32 to vector<1x128xf32>
      %28 = arith.mulf %26, %27 : vector<1x128xf32>
      %c0_16 = arith.constant 0 : index
      %c0_17 = arith.constant 0 : index
      %29 = vector.load %arg7[%c0_16, %c0_17] : memref<1x128xf32, #tpu.memory_space<vmem>>, vector<1x128xf32>
      %cst_18 = arith.constant 4.8828125E-4 : f32
      %30 = vector.broadcast %cst_18 : f32 to vector<1x128xf32>
      %31 = arith.mulf %29, %30 : vector<1x128xf32>
      %32 = arith.mulf %28, %28 : vector<1x128xf32>
      %33 = arith.subf %31, %32 : vector<1x128xf32>
      %cst_19 = arith.constant 0.000000e+00 : f32
      %34 = vector.broadcast %cst_19 : f32 to vector<1x128xf32>
      %35 = arith.maximumf %33, %34 : vector<1x128xf32>
      %c0_20 = arith.constant 0 : index
      %c0_21 = arith.constant 0 : index
      %36 = vector.load %arg2[%c0_20, %c0_21] : memref<1x128xf32, #tpu.memory_space<vmem>>, vector<1x128xf32>
      %cst_22 = arith.constant 9.99999974E-6 : f32
      %37 = vector.broadcast %cst_22 : f32 to vector<1x128xf32>
      %38 = arith.addf %35, %37 : vector<1x128xf32>
      %39 = math.rsqrt %38 : vector<1x128xf32>
      %40 = arith.mulf %36, %39 : vector<1x128xf32>
      %c0_23 = arith.constant 0 : index
      %c0_24 = arith.constant 0 : index
      %41 = vector.load %arg4[%c0_23, %c0_24] : memref<1x128xf32, #tpu.memory_space<vmem>>, vector<1x128xf32>
      tpu.vector_store %arg4[%c0_23, %c0_24], %40 {strides = array<i32>} : memref<1x128xf32, #tpu.memory_space<vmem>>, vector<1x128xf32>,
      %c0_25 = arith.constant 0 : index
      %c0_26 = arith.constant 0 : index
      %42 = vector.load %arg3[%c0_25, %c0_26] : memref<1x128xf32, #tpu.memory_space<vmem>>, vector<1x128xf32>
      %43 = arith.mulf %28, %40 : vector<1x128xf32>
      %44 = arith.subf %42, %43 : vector<1x128xf32>
      %c0_27 = arith.constant 0 : index
      %c0_28 = arith.constant 0 : index
      %45 = vector.load %arg5[%c0_27, %c0_28] : memref<1x128xf32, #tpu.memory_space<vmem>>, vector<1x128xf32>
      tpu.vector_store %arg5[%c0_27, %c0_28], %44 {strides = array<i32>} : memref<1x128xf32, #tpu.memory_space<vmem>>, vector<1x128xf32>,
    } else {
    }
    return
  }
  func.func @transform_0(%arg0: i32) -> (i32, i32) {
    %c0_i32 = arith.constant 0 : i32
    %c0_i32_0 = arith.constant 0 : i32
    return %arg0, %c0_i32 : i32, i32
  }
  func.func @transform_1(%arg0: i32) -> (i32, i32) {
    %c0_i32 = arith.constant 0 : i32
    %c0_i32_0 = arith.constant 0 : i32
    %c0_i32_1 = arith.constant 0 : i32
    return %c0_i32, %c0_i32_0 : i32, i32
  }
  func.func @transform_2(%arg0: i32) -> (i32, i32) {
    %c0_i32 = arith.constant 0 : i32
    %c0_i32_0 = arith.constant 0 : i32
    %c0_i32_1 = arith.constant 0 : i32
    return %c0_i32, %c0_i32_0 : i32, i32
  }
  func.func @transform_3(%arg0: i32) -> (i32, i32) {
    %c0_i32 = arith.constant 0 : i32
    %c0_i32_0 = arith.constant 0 : i32
    %c0_i32_1 = arith.constant 0 : i32
    return %c0_i32, %c0_i32_0 : i32, i32
  }
  func.func @transform_4(%arg0: i32) -> (i32, i32) {
    %c0_i32 = arith.constant 0 : i32
    %c0_i32_0 = arith.constant 0 : i32
    %c0_i32_1 = arith.constant 0 : i32
    return %c0_i32, %c0_i32_0 : i32, i32
  }
}

module attributes {stable_mosaic.version = 11 : i64} {
  func.func @_bn_relu_apply_kernel(%arg0: i32, %arg1: memref<256x128xf32, #tpu.memory_space<vmem>>, %arg2: memref<1x128xf32, #tpu.memory_space<vmem>>, %arg3: memref<1x128xf32, #tpu.memory_space<vmem>>, %arg4: memref<256x128xf32, #tpu.memory_space<vmem>>) attributes {dimension_semantics = [#tpu.dimension_semantics<parallel>], iteration_bounds = array<i64: 8>, scalar_prefetch = 0 : i64, scratch_operands = 0 : i64, tpu.core_type = #tpu.core_type<tc>, window_params = [{transform_indices = @transform_0, window_bounds = array<i64: 256, 128>}, {pipeline_mode = #tpu.pipeline_mode<synchronous>, transform_indices = @transform_1, window_bounds = array<i64: 1, 128>}, {pipeline_mode = #tpu.pipeline_mode<synchronous>, transform_indices = @transform_2, window_bounds = array<i64: 1, 128>}, {transform_indices = @transform_3, window_bounds = array<i64: 256, 128>}]} {
    %c0 = arith.constant 0 : index
    %c0_0 = arith.constant 0 : index
    %0 = vector.load %arg1[%c0, %c0_0] : memref<256x128xf32, #tpu.memory_space<vmem>>, vector<256x128xf32>
    %c0_1 = arith.constant 0 : index
    %c0_2 = arith.constant 0 : index
    %1 = vector.load %arg2[%c0_1, %c0_2] : memref<1x128xf32, #tpu.memory_space<vmem>>, vector<1x128xf32>
    %2 = vector.broadcast %1 : vector<1x128xf32> to vector<256x128xf32>
    %3 = arith.mulf %0, %2 : vector<256x128xf32>
    %c0_3 = arith.constant 0 : index
    %c0_4 = arith.constant 0 : index
    %4 = vector.load %arg3[%c0_3, %c0_4] : memref<1x128xf32, #tpu.memory_space<vmem>>, vector<1x128xf32>
    %5 = vector.broadcast %4 : vector<1x128xf32> to vector<256x128xf32>
    %6 = arith.addf %3, %5 : vector<256x128xf32>
    %cst = arith.constant 0.000000e+00 : f32
    %7 = vector.broadcast %cst : f32 to vector<256x128xf32>
    %8 = arith.maximumf %6, %7 : vector<256x128xf32>
    %c0_5 = arith.constant 0 : index
    %c0_6 = arith.constant 0 : index
    %9 = vector.load %arg4[%c0_5, %c0_6] : memref<256x128xf32, #tpu.memory_space<vmem>>, vector<256x128xf32>
    tpu.vector_store %arg4[%c0_5, %c0_6], %8 {strides = array<i32>} : memref<256x128xf32, #tpu.memory_space<vmem>>, vector<256x128xf32>,
    return
  }
  func.func @transform_0(%arg0: i32) -> (i32, i32) {
    %c0_i32 = arith.constant 0 : i32
    %c0_i32_0 = arith.constant 0 : i32
    return %arg0, %c0_i32 : i32, i32
  }
  func.func @transform_1(%arg0: i32) -> (i32, i32) {
    %c0_i32 = arith.constant 0 : i32
    %c0_i32_0 = arith.constant 0 : i32
    %c0_i32_1 = arith.constant 0 : i32
    return %c0_i32, %c0_i32_0 : i32, i32
  }
  func.func @transform_2(%arg0: i32) -> (i32, i32) {
    %c0_i32 = arith.constant 0 : i32
    %c0_i32_0 = arith.constant 0 : i32
    %c0_i32_1 = arith.constant 0 : i32
    return %c0_i32, %c0_i32_0 : i32, i32
  }
  func.func @transform_3(%arg0: i32) -> (i32, i32) {
    %c0_i32 = arith.constant 0 : i32
    %c0_i32_0 = arith.constant 0 : i32
    return %arg0, %c0_i32 : i32, i32
  }
}

</mosaic_0001>

<bundles_post_ra>
// kernel: up_conv_forward.3
= control target key start
LH: loop header
LB: loop body
LE: loop exit
PB: predicated region body
PF: predicated region fallthrough
CT: control target
= control target key end

     0   :  { %s1148_s12 = smov 0   ;;  %s1150_s13 = smov 0   ;;  %s1298_s0 = inlined_call_operand.vmem [shape: bf16[2048,128], index: 0, kind: input, shape index: {}]   ;;  %s1299_s1 = inlined_call_operand.vmem [shape: bf16[128,128], index: 1, kind: input, shape index: {}]   ;;  %s1300_s2 = inlined_call_operand.vmem [shape: f32[1,128], index: 2, kind: input, shape index: {}]   ;;  %s1301_s3 = inlined_call_operand.vmem [shape: f32[2048,128], index: 3, kind: output, shape index: {}]  }
   0x1   :  { %s1152_s14 = smov 0  }
   0x2 LB: > { %s32_s15 = sadd.s32 1, %s1122_s13  ;;  %p936_p0 = scmp.ge.s32.totalorder %s1126_s14, 1  ;;  %s1126_s14 = sphi %s1152_s14, %s13_s14   ;;  %s1122_s13 = sphi %s1150_s13, %s1303_s13   ;;  %s1118_s12 = sphi %s1148_s12, %s1302_s12  }
   0x3   : > { %p34_p1 = scmp.ge.s32.totalorder %s32_s15, 8  ;;  %p188_p2 = scmp.lt.s32.totalorder %s1126_s14, 9 }
   0x5   : > { %s1305_s15 = smov (%p34_p1, %s32_s15), 0  ;;  %p189_p3 = pnand %p936_p0, %p188_p2 }
   0x6   : > { %s937_s18 = sshll.u32 (!%p189_p3), %s1118_s12, 5 }
   0x7   : > { %192 = sbr.rel (%p189_p3) target bundleno = 271 (0x10f), region = 32  ;;  %p230_p4 = scmp.lt.s32.totalorder (!%p189_p3), %s937_s18, 255 }
   0xc   : > { %v1080_v0 = vld [vmem:[%s1299_s1 + $0x38] sm:$0xff]   ;;  %v1081_v1 = vld [vmem:[%s1299_s1 + $0x30] sm:$0xff]   ;;  %s1307_s18 = smov (!%p230_p4, %s937_s18), 255  ;;  %v1082_v2 = vld [vmem:[%s1299_s1 + $0x28] sm:$0xff]  }
   0xd   : > { %992 = vmatprep.subr.bf16.mxu0 %v1080_v0  ;;  %1040 = vmatprep.subr.bf16.mxu1 %v1080_v0  ;;  %s938_s23 = sshll.u32 %s1307_s18, 2  ;;  %v1083_v3 = vld [vmem:[%s1299_s1 + $0x20] sm:$0xff]   ;;  %v1084_v6 = vld [vmem:[%s1299_s1 + $0x18] sm:$0xff]   ;;  %v1085_v7 = vld [vmem:[%s1299_s1 + $0x10] sm:$0xff]   ;;  %s940_s10 = sshll.u32 %s1307_s18, 3 }
   0xe   : > { %993 = vmatpush3.bf16.msra.mxu0 %v1080_v0  ;;  %1048 = vmatpush3.bf16.msra.mxu1 %v1080_v0  ;;  %s1181_s26 = scalar_lea.vmem %s1298_s0, %s938_s23  ;;  %v1086_v8 = vld [vmem:[%s1299_s1 + $0x8] sm:$0xff]   ;;  %v1087_v9 = vld [vmem:[%s1299_s1] sm:$0xff]   ;;  %s1223_s19 = scalar_lea.vmem %s1301_s3, %s940_s10 }
   0xf   : > { %994 = vmatprep.subr.bf16.mxu0 %v1081_v1  ;;  %1041 = vmatprep.subr.bf16.mxu1 %v1081_v1  ;;  %v1088_v4 = vld [vmem:[%s1181_s26] sm:$0xff]   ;;  %v1090_v10 = vld [vmem:[%s1181_s26 + $0x8] sm:$0xff]   ;;  %v1092_v12 = vld [vmem:[%s1181_s26 + $0x10] sm:$0xff]  }
  0x10   : > { %v1089_v5 = vld [vmem:[%s1181_s26 + $0x40] sm:$0xff]   ;;  %1008 = vmatprep.mubr.bf16.mxu0 %v1088_v4  ;;  %v1091_v11 = vld [vmem:[%s1181_s26 + $0x48] sm:$0xff]   ;;  %v1093_v13 = vld [vmem:[%s1181_s26 + $0x50] sm:$0xff]  }
  0x11   : > { %1024 = vmatprep.mubr.bf16.mxu1 %v1089_v5  ;;  %v1094_v14 = vld [vmem:[%s1181_s26 + $0x18] sm:$0xff]   ;;  %v1096_v16 = vld [vmem:[%s1181_s26 + $0x20] sm:$0xff]   ;;  %v1098_v18 = vld [vmem:[%s1181_s26 + $0x28] sm:$0xff]  }
  0x12   : > { %995 = vmatpush3.bf16.msra.mxu0 %v1081_v1  ;;  %1049 = vmatpush3.bf16.msra.mxu1 %v1081_v1  ;;  %v1095_v15 = vld [vmem:[%s1181_s26 + $0x58] sm:$0xff]   ;;  %v1097_v17 = vld [vmem:[%s1181_s26 + $0x60] sm:$0xff]   ;;  %v1099_v19 = vld [vmem:[%s1181_s26 + $0x68] sm:$0xff]  }
  0x13   : > { %996 = vmatprep.subr.bf16.mxu0 %v1082_v2  ;;  %1042 = vmatprep.subr.bf16.mxu1 %v1082_v2  ;;  %v1100_v20 = vld [vmem:[%s1181_s26 + $0x30] sm:$0xff]   ;;  %v1102_v22 = vld [vmem:[%s1181_s26 + $0x38] sm:$0xff]   ;;  %v1218_v24 = vld [vmem:[%s1300_s2] ss:$0 sm:$0xff] }
  0x14   : > { %v1101_v21 = vld [vmem:[%s1181_s26 + $0x70] sm:$0xff]   ;;  %v1103_v23 = vld [vmem:[%s1181_s26 + $0x78] sm:$0xff]  }
  0x16   : > { %997 = vmatpush3.bf16.msra.mxu0 %v1082_v2  ;;  %1050 = vmatpush3.bf16.msra.mxu1 %v1082_v2 }
  0x17   : > { %998 = vmatprep.subr.bf16.mxu0 %v1083_v3  ;;  %1043 = vmatprep.subr.bf16.mxu1 %v1083_v3 }
  0x1a   : > { %999 = vmatpush3.bf16.msra.mxu0 %v1083_v3  ;;  %1051 = vmatpush3.bf16.msra.mxu1 %v1083_v3 }
  0x1b   : > { %1000 = vmatprep.subr.bf16.mxu0 %v1084_v6  ;;  %1044 = vmatprep.subr.bf16.mxu1 %v1084_v6 }
  0x1e   : > { %1001 = vmatpush3.bf16.msra.mxu0 %v1084_v6  ;;  %1052 = vmatpush3.bf16.msra.mxu1 %v1084_v6 }
  0x1f   : > { %1002 = vmatprep.subr.bf16.mxu0 %v1085_v7  ;;  %1045 = vmatprep.subr.bf16.mxu1 %v1085_v7 }
  0x22   : > { %1003 = vmatpush3.bf16.msra.mxu0 %v1085_v7  ;;  %1053 = vmatpush3.bf16.msra.mxu1 %v1085_v7 }
  0x23   : > { %1004 = vmatprep.subr.bf16.mxu0 %v1086_v8  ;;  %1046 = vmatprep.subr.bf16.mxu1 %v1086_v8 }
  0x26   : > { %1005 = vmatpush3.bf16.msra.mxu0 %v1086_v8  ;;  %1054 = vmatpush3.bf16.msra.mxu1 %v1086_v8 }
  0x27   : > { %1006 = vmatprep.subr.bf16.mxu0 %v1087_v9  ;;  %1047 = vmatprep.subr.bf16.mxu1 %v1087_v9 }
  0x2a   : > { %1007 = vmatpush3.bf16.msra.mxu0 %v1087_v9  ;;  %1055 = vmatpush3.bf16.msra.mxu1 %v1087_v9 }
  0x2d   : > { %1009 = vmatmul.mubr.bf16.vlgmr.msra.gmra.mxu0 %v1090_v10  ;;  %1025 = vmatmul.mubr.bf16.vlgmr.msra.gmra.mxu1 %v1091_v11 }
  0x2e   : > { %1012 = vmatprep.mubr.bf16.mxu0 %v1092_v12  ;;  %1028 = vmatprep.mubr.bf16.mxu1 %v1093_v13 }
  0x35   : > { %1013 = vmatmul.mubr.bf16.gmra.mxu0 %v1094_v14  ;;  %1029 = vmatmul.mubr.bf16.gmra.mxu1 %v1095_v15 }
  0x36   : > { %1016 = vmatprep.mubr.bf16.mxu0 %v1096_v16  ;;  %1032 = vmatprep.mubr.bf16.mxu1 %v1097_v17 }
  0x3d   : > { %1017 = vmatmul.mubr.bf16.gmra.mxu0 %v1098_v18  ;;  %1033 = vmatmul.mubr.bf16.gmra.mxu1 %v1099_v19 }
  0x3e   : > { %1020 = vmatprep.mubr.bf16.mxu0 %v1100_v20  ;;  %1036 = vmatprep.mubr.bf16.mxu1 %v1101_v21 }
  0x45   : > { %1021 = vmatmul.mubr.bf16.gmra.mxu0 %v1102_v22  ;;  %1037 = vmatmul.mubr.bf16.gmra.mxu1 %v1103_v23 }
  0xed   : > { %v1010_v25 = vpop.f32.mrf.mxu0  ;;  %v1026_v26 = vpop.f32.mrf.mxu1 }
  0xee   : > { %v690_v27 = vadd.f32 %v1010_v25, %v1218_v24  ;;  %v706_v28 = vadd.f32 %v1026_v26, %v1218_v24 }
  0xef   : > { %v561_v29 = vpop.f32.mrf.mxu0  ;;  %v625_v30 = vpop.f32.mrf.mxu1 }
  0xf0   : > { %789 = vst [vmem:[%s1223_s19 + $0x10] sm:$0xff] %v690_v27  ;;  %805 = vst [vmem:[%s1223_s19 + $0x90] sm:$0xff] %v706_v28  ;;  %v688_v31 = vadd.f32 %v1218_v24, %v561_v29  ;;  %v704_v32 = vadd.f32 %v1218_v24, %v625_v30 }
  0xf1   : > { %v1011_v33 = vpop.f32.mrf.mxu0  ;;  %v1027_v34 = vpop.f32.mrf.mxu1 }
  0xf2   : > { %787 = vst [vmem:[%s1223_s19] sm:$0xff] %v688_v31  ;;  %803 = vst [vmem:[%s1223_s19 + $0x80] sm:$0xff] %v704_v32  ;;  %v691_v35 = vadd.f32 %v1011_v33, %v1218_v24  ;;  %v707_v36 = vadd.f32 %v1027_v34, %v1218_v24 }
  0xf3   : > { %v564_v37 = vpop.f32.mrf.mxu0  ;;  %v628_v38 = vpop.f32.mrf.mxu1 }
  0xf4   : > { %790 = vst [vmem:[%s1223_s19 + $0x18] sm:$0xff] %v691_v35  ;;  %806 = vst [vmem:[%s1223_s19 + $0x98] sm:$0xff] %v707_v36  ;;  %v689_v39 = vadd.f32 %v1218_v24, %v564_v37  ;;  %v705_v40 = vadd.f32 %v1218_v24, %v628_v38 }
  0xf5   : > { %v1014_v41 = vpop.f32.mrf.mxu0  ;;  %v1030_v42 = vpop.f32.mrf.mxu1 }
  0xf6   : > { %788 = vst [vmem:[%s1223_s19 + $0x8] sm:$0xff] %v689_v39  ;;  %804 = vst [vmem:[%s1223_s19 + $0x88] sm:$0xff] %v705_v40  ;;  %v694_v43 = vadd.f32 %v1014_v41, %v1218_v24  ;;  %v710_v44 = vadd.f32 %v1030_v42, %v1218_v24 }
  0xf7   : > { %v577_v45 = vpop.f32.mrf.mxu0  ;;  %v641_v46 = vpop.f32.mrf.mxu1 }
  0xf8   : > { %793 = vst [vmem:[%s1223_s19 + $0x30] sm:$0xff] %v694_v43  ;;  %809 = vst [vmem:[%s1223_s19 + $0xb0] sm:$0xff] %v710_v44  ;;  %v692_v47 = vadd.f32 %v1218_v24, %v577_v45  ;;  %v708_v48 = vadd.f32 %v1218_v24, %v641_v46 }
  0xf9   : > { %v1015_v49 = vpop.f32.mrf.mxu0  ;;  %v1031_v50 = vpop.f32.mrf.mxu1 }
  0xfa   : > { %791 = vst [vmem:[%s1223_s19 + $0x20] sm:$0xff] %v692_v47  ;;  %807 = vst [vmem:[%s1223_s19 + $0xa0] sm:$0xff] %v708_v48  ;;  %v695_v51 = vadd.f32 %v1015_v49, %v1218_v24  ;;  %v711_v52 = vadd.f32 %v1031_v50, %v1218_v24 }
  0xfb   : > { %v580_v53 = vpop.f32.mrf.mxu0  ;;  %v644_v54 = vpop.f32.mrf.mxu1 }
  0xfc   : > { %794 = vst [vmem:[%s1223_s19 + $0x38] sm:$0xff] %v695_v51  ;;  %810 = vst [vmem:[%s1223_s19 + $0xb8] sm:$0xff] %v711_v52  ;;  %v693_v55 = vadd.f32 %v1218_v24, %v580_v53  ;;  %v709_v56 = vadd.f32 %v1218_v24, %v644_v54 }
  0xfd   : > { %v1018_v57 = vpop.f32.mrf.mxu0  ;;  %v1034_v58 = vpop.f32.mrf.mxu1 }
  0xfe   : > { %792 = vst [vmem:[%s1223_s19 + $0x28] sm:$0xff] %v693_v55  ;;  %808 = vst [vmem:[%s1223_s19 + $0xa8] sm:$0xff] %v709_v56  ;;  %v698_v59 = vadd.f32 %v1018_v57, %v1218_v24  ;;  %v714_v60 = vadd.f32 %v1034_v58, %v1218_v24 }
  0xff   : > { %v593_v61 = vpop.f32.mrf.mxu0  ;;  %v657_v62 = vpop.f32.mrf.mxu1 }
 0x100   : > { %797 = vst [vmem:[%s1223_s19 + $0x50] sm:$0xff] %v698_v59  ;;  %813 = vst [vmem:[%s1223_s19 + $0xd0] sm:$0xff] %v714_v60  ;;  %v696_v63 = vadd.f32 %v1218_v24, %v593_v61  ;;  %v712_v0 = vadd.f32 %v1218_v24, %v657_v62 }
 0x101   : > { %v1019_v1 = vpop.f32.mrf.mxu0  ;;  %v1035_v2 = vpop.f32.mrf.mxu1 }
 0x102   : > { %795 = vst [vmem:[%s1223_s19 + $0x40] sm:$0xff] %v696_v63  ;;  %811 = vst [vmem:[%s1223_s19 + $0xc0] sm:$0xff] %v712_v0  ;;  %v699_v3 = vadd.f32 %v1019_v1, %v1218_v24  ;;  %v715_v4 = vadd.f32 %v1035_v2, %v1218_v24 }
 0x103   : > { %v596_v5 = vpop.f32.mrf.mxu0  ;;  %v660_v6 = vpop.f32.mrf.mxu1 }
 0x104   : > { %798 = vst [vmem:[%s1223_s19 + $0x58] sm:$0xff] %v699_v3  ;;  %814 = vst [vmem:[%s1223_s19 + $0xd8] sm:$0xff] %v715_v4  ;;  %v697_v7 = vadd.f32 %v1218_v24, %v596_v5  ;;  %v713_v8 = vadd.f32 %v1218_v24, %v660_v6 }
 0x105   : > { %v1022_v9 = vpop.f32.mrf.mxu0  ;;  %v1038_v10 = vpop.f32.mrf.mxu1 }
 0x106   : > { %796 = vst [vmem:[%s1223_s19 + $0x48] sm:$0xff] %v697_v7  ;;  %812 = vst [vmem:[%s1223_s19 + $0xc8] sm:$0xff] %v713_v8  ;;  %v702_v11 = vadd.f32 %v1022_v9, %v1218_v24  ;;  %v718_v12 = vadd.f32 %v1038_v10, %v1218_v24 }
 0x107   : > { %v609_v13 = vpop.f32.mrf.mxu0  ;;  %v673_v14 = vpop.f32.mrf.mxu1 }
 0x108   : > { %801 = vst [vmem:[%s1223_s19 + $0x70] sm:$0xff] %v702_v11  ;;  %817 = vst [vmem:[%s1223_s19 + $0xf0] sm:$0xff] %v718_v12  ;;  %v700_v15 = vadd.f32 %v1218_v24, %v609_v13  ;;  %v716_v16 = vadd.f32 %v1218_v24, %v673_v14 }
 0x109   : > { %v1023_v17 = vpop.f32.mrf.mxu0  ;;  %v1039_v18 = vpop.f32.mrf.mxu1 }
 0x10a   : > { %799 = vst [vmem:[%s1223_s19 + $0x60] sm:$0xff] %v700_v15  ;;  %815 = vst [vmem:[%s1223_s19 + $0xe0] sm:$0xff] %v716_v16  ;;  %v703_v19 = vadd.f32 %v1023_v17, %v1218_v24  ;;  %v719_v20 = vadd.f32 %v1039_v18, %v1218_v24 }
 0x10b   : > { %v612_v21 = vpop.f32.mrf.mxu0  ;;  %v676_v22 = vpop.f32.mrf.mxu1 }
 0x10c   : > { %802 = vst [vmem:[%s1223_s19 + $0x78] sm:$0xff] %v703_v19  ;;  %818 = vst [vmem:[%s1223_s19 + $0xf8] sm:$0xff] %v719_v20  ;;  %v701_v23 = vadd.f32 %v1218_v24, %v612_v21  ;;  %v717_v25 = vadd.f32 %v1218_v24, %v676_v22 }
 0x10e   : > { %800 = vst [vmem:[%s1223_s19 + $0x68] sm:$0xff] %v701_v23  ;;  %816 = vst [vmem:[%s1223_s19 + $0xe8] sm:$0xff] %v717_v25 }
 0x10f PF: > { %s13_s14 = sadd.s32 1, %s1126_s14   ;;  %s1302_s12 = smov %s1122_s13 }
 0x110   : > { %p10_p5 = scmp.ge.s32.totalorder %s13_s14, 10   ;;  %s1303_s13 = smov %s1305_s15 }
 0x112   :  { %12 = sbr.rel (!%p10_p5) target bundleno = 2 (0x2), region = 76 }

// kernel: up_conv_forward.4
= control target key start
LH: loop header
LB: loop body
LE: loop exit
PB: predicated region body
PF: predicated region fallthrough
CT: control target
= control target key end

     0   :  { %s574_s15 = smov 0   ;;  %s708_s0 = inlined_call_operand.vmem [shape: f32[2048,128], index: 0, kind: input, shape index: {}]   ;;  %s709_s1 = inlined_call_operand.vmem [shape: f32[1,128], index: 1, kind: input, shape index: {}]   ;;  %s710_s2 = inlined_call_operand.vmem [shape: f32[1,128], index: 2, kind: input, shape index: {}]   ;;  %s711_s3 = inlined_call_operand.vmem [shape: f32[1,128], index: 3, kind: output, shape index: {0}]   ;;  %s712_s4 = inlined_call_operand.vmem [shape: f32[1,128], index: 4, kind: output, shape index: {1}]  }
   0x1 LB: > { %s580_s16 = sadd.s32 4294967295, %s546_s15   ;;  %p521_p0 = scmp.ge.s32.totalorder %s546_s15, 1  ;;  %s546_s15 = sphi %s574_s15, %s15_s15  }
   0x2   : > { %p156_p1 = scmp.lt.s32.totalorder %s546_s15, 9 }
   0x4   : > { %p157_p2 = pnand %p521_p0, %p156_p1 }
   0x5   : > { %s522_s17 = sshll.u32 (!%p157_p2), %s580_s16, 5  ;;  %p524_p4 = scmp.ne.s32.totalorder (!%p157_p2), %s580_s16, 0 }
   0x6   : > { %160 = sbr.rel (%p157_p2) target bundleno = 145 (0x91), region = 32  ;;  %p178_p3 = scmp.lt.s32.totalorder (!%p157_p2), %s522_s17, 255 }
   0xb   : > { %s714_s17 = smov (!%p178_p3, %s522_s17), 255  ;;  %186 = sbr.rel (%p524_p4) target bundleno = 18 (0x12), region = 36 }
   0xc   : > { %s523_s18 = sshll.u32 %s714_s17, 3 }
   0xd   : > { %s588_s21 = scalar_lea.vmem %s708_s0, %s523_s18 }
  0x10   : > { %v548_v0 = vmov 0.0  }
  0x11   : > { %187 = vst [vmem:[#allocation2] sm:$0x1] %v548_v0  ;;  %188 = vst [vmem:[#allocation3] sm:$0x1] %v548_v0 }
  0x12 PF: > { %v221_v1 = vlaneseq  ;;  %s525_s22 = sshll.u32 %s580_s16, 8  ;;  %v189_v11 = vld [vmem:[%s588_s21] sm:$0xff]  ;;  %v190_v12 = vld [vmem:[%s588_s21 + $0x8] sm:$0xff]  ;;  %v191_v15 = vld [vmem:[%s588_s21 + $0x10] sm:$0xff]  ;;  %p526_p5 = scmp.ne.s32.totalorder %s580_s16, 7 }
  0x13   : > { %v595_v4 = vstv %s525_s22  ;;  %v192_v20 = vld [vmem:[%s588_s21 + $0x18] sm:$0xff]  ;;  %v193_v25 = vld [vmem:[%s588_s21 + $0x20] sm:$0xff]  ;;  %v194_v30 = vld [vmem:[%s588_s21 + $0x28] sm:$0xff] }
  0x14   : > { %v591_v2 = vshrl.u32 %v221_v1, 7  ;;  %v195_v37 = vld [vmem:[%s588_s21 + $0x30] sm:$0xff]  ;;  %v196_v43 = vld [vmem:[%s588_s21 + $0x38] sm:$0xff]  ;;  %v197_v50 = vld [vmem:[%s588_s21 + $0x40] sm:$0xff] }
  0x15   : > { %v198_v57 = vld [vmem:[%s588_s21 + $0x48] sm:$0xff]  ;;  %v199_v0 = vld [vmem:[%s588_s21 + $0x50] sm:$0xff] }
  0x16   : > { %v223_v3 = vadd.s32 8, %v591_v2  ;;  %v224_v5 = vadd.s32 16, %v591_v2  ;;  %v225_v6 = vadd.s32 24, %v591_v2  ;;  %v256_v7 = vadd.s32 %v595_v4, %v591_v2 }
  0x17   : > { %v226_v9 = vadd.s32 32, %v591_v2  ;;  %v227_v13 = vadd.s32 40, %v591_v2  ;;  %v228_v16 = vadd.s32 48, %v591_v2  ;;  %v229_v21 = vadd.s32 56, %v591_v2 }
  0x18   : > { %v257_v8 = vadd.s32 %v595_v4, %v223_v3  ;;  %v258_v10 = vadd.s32 %v595_v4, %v224_v5  ;;  %v259_v14 = vadd.s32 %v595_v4, %v225_v6  ;;  %vm288_vm0 = vcmp.lt.s32.totalorder %v256_v7, 2048 }
  0x19   : > { %v260_v17 = vadd.s32 %v595_v4, %v226_v9  ;;  %v320_v18 = vsel %vm288_vm0, %v189_v11, 0.0  ;;  %v261_v22 = vadd.s32 %v595_v4, %v227_v13  ;;  %v230_v26 = vadd.s32 64, %v591_v2  ;;  %v200_v9 = vld [vmem:[%s588_s21 + $0x58] sm:$0xff] }
  0x1a   : > { %vm289_vm1 = vcmp.lt.s32.totalorder %v257_v8, 2048  ;;  %vm290_vm2 = vcmp.lt.s32.totalorder %v258_v10, 2048  ;;  %vm291_vm3 = vcmp.lt.s32.totalorder %v259_v14, 2048  ;;  %v262_v27 = vadd.s32 %v595_v4, %v228_v16  ;;  %v201_v16 = vld [vmem:[%s588_s21 + $0x60] sm:$0xff] }
  0x1b   : > { %v321_v19 = vsel %vm289_vm1, %v190_v12, 0.0  ;;  %v322_v24 = vsel %vm290_vm2, %v191_v15, 0.0  ;;  %vm292_vm4 = vcmp.lt.s32.totalorder %v260_v17, 2048  ;;  %v323_v29 = vsel %vm291_vm3, %v192_v20, 0.0 }
  0x1c   : > { %v353_v23 = vadd.f32 %v321_v19, %v320_v18  ;;  %v231_v31 = vadd.s32 72, %v591_v2  ;;  %v263_v32 = vadd.s32 %v595_v4, %v229_v21  ;;  %vm293_vm5 = vcmp.lt.s32.totalorder %v261_v22, 2048 }
  0x1d   : > { %v324_v34 = vsel %vm292_vm4, %v193_v25, 0.0  ;;  %v393_v35 = vmul.f32 %v320_v18, %v320_v18  ;;  %v394_v36 = vmul.f32 %v321_v19, %v321_v19  ;;  %v232_v38 = vadd.s32 80, %v591_v2 }
  0x1e   : > { %v354_v28 = vadd.f32 %v353_v23, %v322_v24  ;;  %v264_v39 = vadd.s32 %v595_v4, %v230_v26  ;;  %vm294_vm6 = vcmp.lt.s32.totalorder %v262_v27, 2048  ;;  %v325_v41 = vsel %vm293_vm5, %v194_v30, 0.0  ;;  %v202_v23 = vld [vmem:[%s588_s21 + $0x68] sm:$0xff]  ;;  %v203_v30 = vld [vmem:[%s588_s21 + $0x70] sm:$0xff] }
  0x1f   : > { %v395_v42 = vmul.f32 %v322_v24, %v322_v24  ;;  %v233_v44 = vadd.s32 88, %v591_v2  ;;  %v265_v45 = vadd.s32 %v595_v4, %v231_v31  ;;  %vm295_vm7 = vcmp.lt.s32.totalorder %v263_v32, 2048 }
  0x20   : > { %v355_v33 = vadd.f32 %v354_v28, %v323_v29  ;;  %v326_v47 = vsel %vm294_vm6, %v195_v37, 0.0  ;;  %v396_v48 = vmul.f32 %v323_v29, %v323_v29  ;;  %v425_v49 = vadd.f32 %v394_v36, %v393_v35  ;;  %v204_v37 = vld [vmem:[%s588_s21 + $0x78] sm:$0xff] }
  0x21   : > { %v234_v51 = vadd.s32 96, %v591_v2  ;;  %v266_v52 = vadd.s32 %v595_v4, %v232_v38  ;;  %vm296_vm8 = vcmp.lt.s32.totalorder %v264_v39, 2048  ;;  %v327_v54 = vsel %vm295_vm7, %v196_v43, 0.0 }
  0x22   : > { %v356_v40 = vadd.f32 %v355_v33, %v324_v34  ;;  %v397_v55 = vmul.f32 %v324_v34, %v324_v34  ;;  %v426_v56 = vadd.f32 %v425_v49, %v395_v42  ;;  %v235_v58 = vadd.s32 104, %v591_v2 }
  0x23   : > { %v267_v59 = vadd.s32 %v595_v4, %v233_v44  ;;  %vm297_vm9 = vcmp.lt.s32.totalorder %v265_v45, 2048  ;;  %v328_v61 = vsel %vm296_vm8, %v197_v50, 0.0  ;;  %v398_v62 = vmul.f32 %v325_v41, %v325_v41  ;;  %v205_v44 = vld [vmem:[%s588_s21 + $0x80] sm:$0xff] }
  0x24   : > { %v357_v46 = vadd.f32 %v356_v40, %v325_v41  ;;  %v427_v63 = vadd.f32 %v426_v56, %v396_v48  ;;  %v236_v1 = vadd.s32 112, %v591_v2  ;;  %v268_v3 = vadd.s32 %v595_v4, %v234_v51  ;;  %v206_v51 = vld [vmem:[%s588_s21 + $0x88] sm:$0xff] }
  0x25   : > { %vm298_vm10 = vcmp.lt.s32.totalorder %v266_v52, 2048  ;;  %v329_v6 = vsel %vm297_vm9, %v198_v57, 0.0  ;;  %v399_v7 = vmul.f32 %v326_v47, %v326_v47  ;;  %v237_v10 = vadd.s32 120, %v591_v2 }
  0x26   : > { %v358_v53 = vadd.f32 %v357_v46, %v326_v47  ;;  %v428_v8 = vadd.f32 %v427_v63, %v397_v55  ;;  %v269_v11 = vadd.s32 %v595_v4, %v235_v58  ;;  %vm299_vm11 = vcmp.lt.s32.totalorder %v267_v59, 2048  ;;  %v207_v58 = vld [vmem:[%s588_s21 + $0x90] sm:$0xff] }
  0x27   : > { %v330_v13 = vsel %vm298_vm10, %v199_v0, 0.0  ;;  %v400_v14 = vmul.f32 %v327_v54, %v327_v54  ;;  %v238_v17 = vadd.s32 128, %v591_v2  ;;  %v270_v18 = vadd.s32 %v595_v4, %v236_v1  ;;  %v208_v1 = vld [vmem:[%s588_s21 + $0x98] sm:$0xff] }
  0x28   : > { %v359_v60 = vadd.f32 %v358_v53, %v327_v54  ;;  %v429_v15 = vadd.f32 %v428_v8, %v398_v62  ;;  %vm300_vm12 = vcmp.lt.s32.totalorder %v268_v3, 2048  ;;  %v331_v20 = vsel %vm299_vm11, %v200_v9, 0.0 }
  0x29   : > { %v401_v21 = vmul.f32 %v328_v61, %v328_v61  ;;  %v239_v24 = vadd.s32 136, %v591_v2  ;;  %v271_v25 = vadd.s32 %v595_v4, %v237_v10  ;;  %vm301_vm13 = vcmp.lt.s32.totalorder %v269_v11, 2048  ;;  %v209_v10 = vld [vmem:[%s588_s21 + $0xa0] sm:$0xff] }
  0x2a   : > { %v360_v5 = vadd.f32 %v359_v60, %v328_v61  ;;  %v430_v22 = vadd.f32 %v429_v15, %v399_v7  ;;  %v332_v27 = vsel %vm300_vm12, %v201_v16, 0.0  ;;  %v402_v28 = vmul.f32 %v329_v6, %v329_v6 }
  0x2b   : > { %v240_v31 = vadd.s32 144, %v591_v2  ;;  %v272_v32 = vadd.s32 %v595_v4, %v238_v17  ;;  %vm302_vm14 = vcmp.lt.s32.totalorder %v270_v18, 2048  ;;  %v333_v34 = vsel %vm301_vm13, %v202_v23, 0.0  ;;  %v210_v17 = vld [vmem:[%s588_s21 + $0xa8] sm:$0xff] }
  0x2c   : > { %v361_v12 = vadd.f32 %v360_v5, %v329_v6  ;;  %v431_v29 = vadd.f32 %v430_v22, %v400_v14  ;;  %v403_v35 = vmul.f32 %v330_v13, %v330_v13  ;;  %v241_v38 = vadd.s32 152, %v591_v2 }
  0x2d   : > { %v273_v39 = vadd.s32 %v595_v4, %v239_v24  ;;  %vm303_vm15 = vcmp.lt.s32.totalorder %v271_v25, 2048  ;;  %v334_v41 = vsel %vm302_vm14, %v203_v30, 0.0  ;;  %v404_v42 = vmul.f32 %v331_v20, %v331_v20  ;;  %v211_v24 = vld [vmem:[%s588_s21 + $0xb0] sm:$0xff] }
  0x2e   : > { %v362_v19 = vadd.f32 %v361_v12, %v330_v13  ;;  %v432_v36 = vadd.f32 %v431_v29, %v401_v21  ;;  %v242_v45 = vadd.s32 160, %v591_v2  ;;  %v274_v46 = vadd.s32 %v595_v4, %v240_v31  ;;  %v212_v31 = vld [vmem:[%s588_s21 + $0xb8] sm:$0xff] }
  0x2f   : > { %vm304_vm0 = vcmp.lt.s32.totalorder %v272_v32, 2048  ;;  %v335_v48 = vsel %vm303_vm15, %v204_v37, 0.0  ;;  %v405_v49 = vmul.f32 %v332_v27, %v332_v27  ;;  %v243_v52 = vadd.s32 168, %v591_v2 }
  0x30   : > { %v363_v26 = vadd.f32 %v362_v19, %v331_v20  ;;  %v433_v43 = vadd.f32 %v432_v36, %v402_v28  ;;  %v275_v53 = vadd.s32 %v595_v4, %v241_v38  ;;  %vm305_vm1 = vcmp.lt.s32.totalorder %v273_v39, 2048  ;;  %v213_v38 = vld [vmem:[%s588_s21 + $0xc0] sm:$0xff] }
  0x31   : > { %v336_v55 = vsel %vm304_vm0, %v205_v44, 0.0  ;;  %v406_v56 = vmul.f32 %v333_v34, %v333_v34  ;;  %v244_v59 = vadd.s32 176, %v591_v2  ;;  %v276_v60 = vadd.s32 %v595_v4, %v242_v45  ;;  %v214_v45 = vld [vmem:[%s588_s21 + $0xc8] sm:$0xff] }
  0x32   : > { %v364_v33 = vadd.f32 %v363_v26, %v332_v27  ;;  %v434_v50 = vadd.f32 %v433_v43, %v403_v35  ;;  %vm306_vm2 = vcmp.lt.s32.totalorder %v274_v46, 2048  ;;  %v337_v62 = vsel %vm305_vm1, %v206_v51, 0.0 }
  0x33   : > { %v407_v63 = vmul.f32 %v334_v41, %v334_v41  ;;  %v245_v3 = vadd.s32 184, %v591_v2  ;;  %v277_v5 = vadd.s32 %v595_v4, %v243_v52  ;;  %vm307_vm3 = vcmp.lt.s32.totalorder %v275_v53, 2048  ;;  %v215_v52 = vld [vmem:[%s588_s21 + $0xd0] sm:$0xff] }
  0x34   : > { %v365_v40 = vadd.f32 %v364_v33, %v333_v34  ;;  %v435_v57 = vadd.f32 %v434_v50, %v404_v42  ;;  %v338_v7 = vsel %vm306_vm2, %v207_v58, 0.0  ;;  %v408_v8 = vmul.f32 %v335_v48, %v335_v48 }
  0x35   : > { %v246_v11 = vadd.s32 192, %v591_v2  ;;  %v278_v12 = vadd.s32 %v595_v4, %v244_v59  ;;  %vm308_vm4 = vcmp.lt.s32.totalorder %v276_v60, 2048  ;;  %v339_v14 = vsel %vm307_vm3, %v208_v1, 0.0  ;;  %v216_v59 = vld [vmem:[%s588_s21 + $0xd8] sm:$0xff] }
  0x36   : > { %v366_v47 = vadd.f32 %v365_v40, %v334_v41  ;;  %v436_v0 = vadd.f32 %v435_v57, %v405_v49  ;;  %v409_v15 = vmul.f32 %v336_v55, %v336_v55  ;;  %v247_v18 = vadd.s32 200, %v591_v2 }
  0x37   : > { %v279_v19 = vadd.s32 %v595_v4, %v245_v3  ;;  %vm309_vm5 = vcmp.lt.s32.totalorder %v277_v5, 2048  ;;  %v340_v21 = vsel %vm308_vm4, %v209_v10, 0.0  ;;  %v410_v22 = vmul.f32 %v337_v62, %v337_v62  ;;  %v217_v3 = vld [vmem:[%s588_s21 + $0xe0] sm:$0xff]  ;;  %v218_v10 = vld [vmem:[%s588_s21 + $0xe8] sm:$0xff] }
  0x38   : > { %v367_v54 = vadd.f32 %v366_v47, %v335_v48  ;;  %v437_v9 = vadd.f32 %v436_v0, %v406_v56  ;;  %v248_v25 = vadd.s32 208, %v591_v2  ;;  %v280_v26 = vadd.s32 %v595_v4, %v246_v11 }
  0x39   : > { %vm310_vm6 = vcmp.lt.s32.totalorder %v278_v12, 2048  ;;  %v341_v28 = vsel %vm309_vm5, %v210_v17, 0.0  ;;  %v411_v29 = vmul.f32 %v338_v7, %v338_v7  ;;  %v249_v32 = vadd.s32 216, %v591_v2 }
  0x3a   : > { %v368_v61 = vadd.f32 %v367_v54, %v336_v55  ;;  %v438_v16 = vadd.f32 %v437_v9, %v407_v63  ;;  %v281_v33 = vadd.s32 %v595_v4, %v247_v18  ;;  %vm311_vm7 = vcmp.lt.s32.totalorder %v279_v19, 2048 }
  0x3b   : > { %v342_v35 = vsel %vm310_vm6, %v211_v24, 0.0  ;;  %v412_v36 = vmul.f32 %v339_v14, %v339_v14  ;;  %v250_v39 = vadd.s32 224, %v591_v2  ;;  %v282_v40 = vadd.s32 %v595_v4, %v248_v25 }
  0x3c   : > { %v369_v6 = vadd.f32 %v368_v61, %v337_v62  ;;  %v439_v23 = vadd.f32 %v438_v16, %v408_v8  ;;  %vm312_vm8 = vcmp.lt.s32.totalorder %v280_v26, 2048  ;;  %v343_v42 = vsel %vm311_vm7, %v212_v31, 0.0 }
  0x3d   : > { %v413_v43 = vmul.f32 %v340_v21, %v340_v21  ;;  %v251_v46 = vadd.s32 232, %v591_v2  ;;  %v283_v47 = vadd.s32 %v595_v4, %v249_v32  ;;  %vm313_vm9 = vcmp.lt.s32.totalorder %v281_v33, 2048 }
  0x3e   : > { %v370_v13 = vadd.f32 %v369_v6, %v338_v7  ;;  %v440_v30 = vadd.f32 %v439_v23, %v409_v15  ;;  %v344_v49 = vsel %vm312_vm8, %v213_v38, 0.0  ;;  %v414_v50 = vmul.f32 %v341_v28, %v341_v28  ;;  %v219_v15 = vld [vmem:[%s588_s21 + $0xf0] sm:$0xff] }
  0x3f   : > { %v252_v53 = vadd.s32 240, %v591_v2  ;;  %v284_v54 = vadd.s32 %v595_v4, %v250_v39  ;;  %vm314_vm10 = vcmp.lt.s32.totalorder %v282_v40, 2048  ;;  %v345_v56 = vsel %vm313_vm9, %v214_v45, 0.0 }
  0x40   : > { %v371_v20 = vadd.f32 %v370_v13, %v339_v14  ;;  %v441_v37 = vadd.f32 %v440_v30, %v410_v22  ;;  %v415_v57 = vmul.f32 %v342_v35, %v342_v35  ;;  %v253_v60 = vadd.s32 248, %v591_v2 }
  0x41   : > { %v285_v61 = vadd.s32 %v595_v4, %v251_v46  ;;  %vm315_vm11 = vcmp.lt.s32.totalorder %v283_v47, 2048  ;;  %v346_v63 = vsel %vm314_vm10, %v215_v52, 0.0  ;;  %v416_v0 = vmul.f32 %v343_v42, %v343_v42 }
  0x42   : > { %v372_v27 = vadd.f32 %v371_v20, %v340_v21  ;;  %v442_v44 = vadd.f32 %v441_v37, %v411_v29  ;;  %v286_v5 = vadd.s32 %v595_v4, %v252_v53  ;;  %vm316_vm12 = vcmp.lt.s32.totalorder %v284_v54, 2048  ;;  %v220_v20 = vld [vmem:[%s588_s21 + $0xf8] sm:$0xff] }
  0x43   : > { %v347_v7 = vsel %vm315_vm11, %v216_v59, 0.0  ;;  %v417_v8 = vmul.f32 %v344_v49, %v344_v49  ;;  %v287_v2 = vadd.s32 %v595_v4, %v253_v60  ;;  %vm317_vm13 = vcmp.lt.s32.totalorder %v285_v61, 2048 }
  0x44   : > { %v373_v34 = vadd.f32 %v372_v27, %v341_v28  ;;  %v443_v51 = vadd.f32 %v442_v44, %v412_v36  ;;  %v348_v12 = vsel %vm316_vm12, %v217_v3, 0.0  ;;  %v418_v13 = vmul.f32 %v345_v56, %v345_v56 }
  0x45   : > { %vm318_vm14 = vcmp.lt.s32.totalorder %v286_v5, 2048  ;;  %v349_v17 = vsel %vm317_vm13, %v218_v10, 0.0  ;;  %v419_v18 = vmul.f32 %v346_v63, %v346_v63  ;;  %vm319_vm15 = vcmp.lt.s32.totalorder %v287_v2, 2048 }
  0x46   : > { %v374_v41 = vadd.f32 %v373_v34, %v342_v35  ;;  %v444_v58 = vadd.f32 %v443_v51, %v413_v43  ;;  %v350_v22 = vsel %vm318_vm14, %v219_v15, 0.0  ;;  %v420_v23 = vmul.f32 %v347_v7, %v347_v7 }
  0x47   : > { %v351_v26 = vsel %vm319_vm15, %v220_v20, 0.0  ;;  %v421_v4 = vmul.f32 %v348_v12, %v348_v12  ;;  %v422_v29 = vmul.f32 %v349_v17, %v349_v17  ;;  %v423_v32 = vmul.f32 %v350_v22, %v350_v22 }
  0x48   : > { %v375_v48 = vadd.f32 %v374_v41, %v343_v42  ;;  %v445_v1 = vadd.f32 %v444_v58, %v414_v50  ;;  %v424_v35 = vmul.f32 %v351_v26, %v351_v26  ;;  %v352_v42 = vld [vmem:[#allocation2] sm:$0x1]  ;;  %v392_v50 = vld [vmem:[#allocation3] sm:$0x1] }
  0x4a   : > { %v376_v55 = vadd.f32 %v375_v48, %v344_v49  ;;  %v446_v9 = vadd.f32 %v445_v1, %v415_v57 }
  0x4c   : > { %v377_v62 = vadd.f32 %v376_v55, %v345_v56  ;;  %v447_v14 = vadd.f32 %v446_v9, %v416_v0 }
  0x4e   : > { %v378_v6 = vadd.f32 %v377_v62, %v346_v63  ;;  %v448_v19 = vadd.f32 %v447_v14, %v417_v8 }
  0x50   : > { %v379_v11 = vadd.f32 %v378_v6, %v347_v7  ;;  %v449_v24 = vadd.f32 %v448_v19, %v418_v13 }
  0x52   : > { %v380_v16 = vadd.f32 %v379_v11, %v348_v12  ;;  %v450_v27 = vadd.f32 %v449_v24, %v419_v18 }
  0x54   : > { %v381_v21 = vadd.f32 %v380_v16, %v349_v17  ;;  %v451_v30 = vadd.f32 %v450_v27, %v420_v23 }
  0x56   : > { %v382_v25 = vadd.f32 %v381_v21, %v350_v22  ;;  %v452_v33 = vadd.f32 %v451_v30, %v421_v4 }
  0x58   : > { %v383_v28 = vadd.f32 %v382_v25, %v351_v26  ;;  %v453_v36 = vadd.f32 %v452_v33, %v422_v29 }
  0x5a   : > { %v384_v31 = vrot.slane %v383_v28, 4  ;;  %v454_v38 = vadd.f32 %v453_v36, %v423_v32 }
  0x5c   : > { %v385_v34 = vadd.f32 %v384_v31, %v383_v28  ;;  %v455_v40 = vadd.f32 %v454_v38, %v424_v35 }
  0x5e   : > { %v386_v37 = vrot.slane %v385_v34, 2  ;;  %v456_v43 = vrot.slane %v455_v40, 4 }
  0x60   : > { %v387_v39 = vadd.f32 %v386_v37, %v385_v34  ;;  %v457_v45 = vadd.f32 %v456_v43, %v455_v40 }
  0x62   : > { %v388_v41 = vrot.slane %v387_v39, 1  ;;  %v458_v47 = vrot.slane %v457_v45, 2 }
  0x64   : > { %v389_v44 = vadd.f32 %v388_v41, %v387_v39  ;;  %v459_v48 = vadd.f32 %v458_v47, %v457_v45 }
  0x66   : > { %v390_v46 = vadd.f32 %v389_v44, %v352_v42  ;;  %v460_v49 = vrot.slane %v459_v48, 1 }
  0x68   : > { %391 = vst [vmem:[#allocation2] sm:$0x1] %v390_v46  ;;  %v461_v51 = vadd.f32 %v460_v49, %v459_v48  ;;  %467 = sbr.rel (%p526_p5) target bundleno = 145 (0x91), region = 40 }
  0x6a   : > { %v462_v52 = vadd.f32 %v461_v51, %v392_v50 }
  0x6c   : > { %463 = vst [vmem:[#allocation3] sm:$0x1] %v462_v52 }
  0x6d   : > { %v475_v61 = vld [vmem:[%s709_s1] sm:$0x1] }
  0x6e   : > { %v480_v0 = vld [vmem:[%s710_s2] sm:$0x1] }
  0x6f   : > { %v468_v53 = vld [vmem:[#allocation2] sm:$0x1] }
  0x70   : > { %v469_v55 = vmul.f32 0.00048828125, %v468_v53 }
  0x72   : > { %v472_v57 = vmul.f32 %v469_v55, %v469_v55 }
  0x73   : > { %v470_v54 = vld [vmem:[#allocation3] sm:$0x1] }
  0x74   : > { %v471_v56 = vmul.f32 0.00048828125, %v470_v54 }
  0x76   : > { %v473_v58 = vsub.f32 %v471_v56, %v472_v57 }
  0x78   : > { %v474_v59 = vmax.f32 %v473_v58, 0.0 }
  0x7a   : > { %v476_v60 = vadd.f32 1e-05, %v474_v59 }
  0x7c   : > { %538 = vrsqrt.f32 %v476_v60 }
  0x89   : > { %v539_v62 = vpop.eup %538 }
  0x8a   : > { %v478_v63 = vmul.f32 %v539_v62, %v475_v61 }
  0x8c   : > { %479 = vst [vmem:[%s711_s3] sm:$0x1] %v478_v63  ;;  %v481_v1 = vmul.f32 %v478_v63, %v469_v55 }
  0x8e   : > { %v482_v3 = vsub.f32 %v480_v0, %v481_v1 }
  0x90   : > { %483 = vst [vmem:[%s712_s4] sm:$0x1] %v482_v3 }
  0x91 PF: > { %s15_s15 = sadd.s32 1, %s546_s15  }
  0x92   : > { %p12_p6 = scmp.ge.s32.totalorder %s15_s15, 10  }
  0x94   :  { %14 = sbr.rel (!%p12_p6) target bundleno = 1 (0x1), region = 74 }

// kernel: up_conv_forward.5
= control target key start
LH: loop header
LB: loop body
LE: loop exit
PB: predicated region body
PF: predicated region fallthrough
CT: control target
= control target key end

     0   :  { %s453_s12 = smov 0   ;;  %s612_s0 = inlined_call_operand.vmem [shape: f32[2048,128], index: 0, kind: input, shape index: {}]   ;;  %s613_s1 = inlined_call_operand.vmem [shape: f32[1,128], index: 1, kind: input, shape index: {}]   ;;  %s614_s2 = inlined_call_operand.vmem [shape: f32[1,128], index: 2, kind: input, shape index: {}]   ;;  %s615_s3 = inlined_call_operand.vmem [shape: f32[2048,128], index: 3, kind: output, shape index: {}]  }
   0x1 LB: > { %s404_s13 = sadd.s32 4294967295, %s431_s12   ;;  %p408_p0 = scmp.ge.s32.totalorder %s431_s12, 1  ;;  %s431_s12 = sphi %s453_s12, %s13_s12  }
   0x2   : > { %p138_p1 = scmp.lt.s32.totalorder %s431_s12, 9 }
   0x4   : > { %p139_p2 = pnand %p408_p0, %p138_p1 }
   0x5   : > { %s409_s14 = sshll.u32 (!%p139_p2), %s404_s13, 5 }
   0x6   : > { %142 = sbr.rel (%p139_p2) target bundleno = 44 (0x2c), region = 32  ;;  %p163_p3 = scmp.lt.s32.totalorder (!%p139_p2), %s409_s14, 255 }
   0xb   : > { %s617_s14 = smov (!%p163_p3, %s409_s14), 255  ;;  %v464_v0 = vld [vmem:[%s613_s1] ss:$0 sm:$0xff] }
   0xc   : > { %s410_s15 = sshll.u32 %s617_s14, 3  ;;  %v474_v1 = vld [vmem:[%s614_s2] ss:$0 sm:$0xff] }
   0xd   : > { %s469_s20 = scalar_lea.vmem %s612_s0, %s410_s15  ;;  %s497_s25 = scalar_lea.vmem %s615_s3, %s410_s15 }
   0xe   : > { %v174_v2 = vld [vmem:[%s469_s20] sm:$0xff]  ;;  %v175_v3 = vld [vmem:[%s469_s20 + $0x8] sm:$0xff]  ;;  %v176_v4 = vld [vmem:[%s469_s20 + $0x10] sm:$0xff] }
   0xf   : > { %v213_v5 = vmul.f32 %v464_v0, %v174_v2  ;;  %v214_v6 = vmul.f32 %v464_v0, %v175_v3  ;;  %v215_v7 = vmul.f32 %v464_v0, %v176_v4  ;;  %v177_v8 = vld [vmem:[%s469_s20 + $0x18] sm:$0xff]  ;;  %v178_v9 = vld [vmem:[%s469_s20 + $0x20] sm:$0xff]  ;;  %v179_v10 = vld [vmem:[%s469_s20 + $0x28] sm:$0xff] }
  0x10   : > { %v216_v11 = vmul.f32 %v464_v0, %v177_v8  ;;  %v217_v12 = vmul.f32 %v464_v0, %v178_v9  ;;  %v218_v13 = vmul.f32 %v464_v0, %v179_v10  ;;  %v180_v14 = vld [vmem:[%s469_s20 + $0x30] sm:$0xff]  ;;  %v181_v15 = vld [vmem:[%s469_s20 + $0x38] sm:$0xff]  ;;  %v182_v24 = vld [vmem:[%s469_s20 + $0x40] sm:$0xff] }
  0x11   : > { %v252_v16 = vadd.f32 %v474_v1, %v213_v5  ;;  %v253_v17 = vadd.f32 %v474_v1, %v214_v6  ;;  %v254_v18 = vadd.f32 %v474_v1, %v215_v7  ;;  %v219_v19 = vmul.f32 %v464_v0, %v180_v14  ;;  %v183_v25 = vld [vmem:[%s469_s20 + $0x48] sm:$0xff]  ;;  %v184_v26 = vld [vmem:[%s469_s20 + $0x50] sm:$0xff]  ;;  %v185_v31 = vld [vmem:[%s469_s20 + $0x58] sm:$0xff] }
  0x12   : > { %v255_v20 = vadd.f32 %v474_v1, %v216_v11  ;;  %v256_v21 = vadd.f32 %v474_v1, %v217_v12  ;;  %v257_v22 = vadd.f32 %v474_v1, %v218_v13  ;;  %v220_v23 = vmul.f32 %v464_v0, %v181_v15  ;;  %v186_v32 = vld [vmem:[%s469_s20 + $0x60] sm:$0xff]  ;;  %v187_v33 = vld [vmem:[%s469_s20 + $0x68] sm:$0xff]  ;;  %v188_v38 = vld [vmem:[%s469_s20 + $0x70] sm:$0xff] }
  0x13   : > { %v284_v27 = vmax.f32 %v252_v16, 0.0  ;;  %v285_v28 = vmax.f32 %v253_v17, 0.0  ;;  %v286_v29 = vmax.f32 %v254_v18, 0.0  ;;  %v258_v30 = vadd.f32 %v474_v1, %v219_v19  ;;  %v189_v43 = vld [vmem:[%s469_s20 + $0x78] sm:$0xff]  ;;  %v190_v56 = vld [vmem:[%s469_s20 + $0x80] sm:$0xff]  ;;  %v191_v57 = vld [vmem:[%s469_s20 + $0x88] sm:$0xff] }
  0x14   : > { %v287_v34 = vmax.f32 %v255_v20, 0.0  ;;  %v288_v35 = vmax.f32 %v256_v21, 0.0  ;;  %v289_v36 = vmax.f32 %v257_v22, 0.0  ;;  %v259_v37 = vadd.f32 %v474_v1, %v220_v23  ;;  %v192_v58 = vld [vmem:[%s469_s20 + $0x90] sm:$0xff]  ;;  %v193_v63 = vld [vmem:[%s469_s20 + $0x98] sm:$0xff]  ;;  %v194_v2 = vld [vmem:[%s469_s20 + $0xa0] sm:$0xff] }
  0x15   : > { %316 = vst [vmem:[%s497_s25] sm:$0xff] %v284_v27  ;;  %317 = vst [vmem:[%s497_s25 + $0x8] sm:$0xff] %v285_v28  ;;  %v290_v39 = vmax.f32 %v258_v30, 0.0  ;;  %v221_v40 = vmul.f32 %v464_v0, %v182_v24  ;;  %v222_v41 = vmul.f32 %v464_v0, %v183_v25  ;;  %v223_v42 = vmul.f32 %v464_v0, %v184_v26  ;;  %v195_v3 = vld [vmem:[%s469_s20 + $0xa8] sm:$0xff]  ;;  %v196_v8 = vld [vmem:[%s469_s20 + $0xb0] sm:$0xff] }
  0x16   : > { %318 = vst [vmem:[%s497_s25 + $0x10] sm:$0xff] %v286_v29  ;;  %319 = vst [vmem:[%s497_s25 + $0x18] sm:$0xff] %v287_v34  ;;  %v291_v44 = vmax.f32 %v259_v37, 0.0  ;;  %v224_v45 = vmul.f32 %v464_v0, %v185_v31  ;;  %v225_v46 = vmul.f32 %v464_v0, %v186_v32  ;;  %v226_v47 = vmul.f32 %v464_v0, %v187_v33  ;;  %v197_v13 = vld [vmem:[%s469_s20 + $0xb8] sm:$0xff]  ;;  %v198_v26 = vld [vmem:[%s469_s20 + $0xc0] sm:$0xff] }
  0x17   : > { %320 = vst [vmem:[%s497_s25 + $0x20] sm:$0xff] %v288_v35  ;;  %321 = vst [vmem:[%s497_s25 + $0x28] sm:$0xff] %v289_v36  ;;  %v260_v48 = vadd.f32 %v474_v1, %v221_v40  ;;  %v261_v49 = vadd.f32 %v474_v1, %v222_v41  ;;  %v262_v50 = vadd.f32 %v474_v1, %v223_v42  ;;  %v199_v27 = vld [vmem:[%s469_s20 + $0xc8] sm:$0xff]  ;;  %v200_v28 = vld [vmem:[%s469_s20 + $0xd0] sm:$0xff] }
  0x18   : > { %322 = vst [vmem:[%s497_s25 + $0x30] sm:$0xff] %v290_v39  ;;  %v227_v51 = vmul.f32 %v464_v0, %v188_v38  ;;  %323 = vst [vmem:[%s497_s25 + $0x38] sm:$0xff] %v291_v44  ;;  %v263_v52 = vadd.f32 %v474_v1, %v224_v45  ;;  %v264_v53 = vadd.f32 %v474_v1, %v225_v46  ;;  %v201_v33 = vld [vmem:[%s469_s20 + $0xd8] sm:$0xff]  ;;  %v202_v34 = vld [vmem:[%s469_s20 + $0xe0] sm:$0xff] }
  0x19   : > { %v265_v54 = vadd.f32 %v474_v1, %v226_v47  ;;  %v228_v55 = vmul.f32 %v464_v0, %v189_v43  ;;  %v292_v59 = vmax.f32 %v260_v48, 0.0  ;;  %v293_v60 = vmax.f32 %v261_v49, 0.0  ;;  %v203_v35 = vld [vmem:[%s469_s20 + $0xe8] sm:$0xff]  ;;  %v204_v40 = vld [vmem:[%s469_s20 + $0xf0] sm:$0xff]  ;;  %v205_v45 = vld [vmem:[%s469_s20 + $0xf8] sm:$0xff] }
  0x1a   : > { %v294_v61 = vmax.f32 %v262_v50, 0.0  ;;  %v266_v62 = vadd.f32 %v474_v1, %v227_v51  ;;  %v295_v4 = vmax.f32 %v263_v52, 0.0  ;;  %v296_v5 = vmax.f32 %v264_v53, 0.0 }
  0x1b   : > { %v297_v6 = vmax.f32 %v265_v54, 0.0  ;;  %v267_v7 = vadd.f32 %v474_v1, %v228_v55  ;;  %324 = vst [vmem:[%s497_s25 + $0x40] sm:$0xff] %v292_v59  ;;  %325 = vst [vmem:[%s497_s25 + $0x48] sm:$0xff] %v293_v60  ;;  %v229_v10 = vmul.f32 %v464_v0, %v190_v56  ;;  %v230_v11 = vmul.f32 %v464_v0, %v191_v57 }
  0x1c   : > { %326 = vst [vmem:[%s497_s25 + $0x50] sm:$0xff] %v294_v61  ;;  %v298_v9 = vmax.f32 %v266_v62, 0.0  ;;  %v231_v12 = vmul.f32 %v464_v0, %v192_v58  ;;  %327 = vst [vmem:[%s497_s25 + $0x58] sm:$0xff] %v295_v4  ;;  %v232_v15 = vmul.f32 %v464_v0, %v193_v63  ;;  %v233_v16 = vmul.f32 %v464_v0, %v194_v2 }
  0x1d   : > { %328 = vst [vmem:[%s497_s25 + $0x60] sm:$0xff] %v296_v5  ;;  %329 = vst [vmem:[%s497_s25 + $0x68] sm:$0xff] %v297_v6  ;;  %v299_v14 = vmax.f32 %v267_v7, 0.0  ;;  %v234_v17 = vmul.f32 %v464_v0, %v195_v3  ;;  %v268_v18 = vadd.f32 %v474_v1, %v229_v10  ;;  %v269_v19 = vadd.f32 %v474_v1, %v230_v11 }
  0x1e   : > { %330 = vst [vmem:[%s497_s25 + $0x70] sm:$0xff] %v298_v9  ;;  %v270_v20 = vadd.f32 %v474_v1, %v231_v12  ;;  %v235_v21 = vmul.f32 %v464_v0, %v196_v8  ;;  %v271_v22 = vadd.f32 %v474_v1, %v232_v15  ;;  %v272_v23 = vadd.f32 %v474_v1, %v233_v16 }
  0x1f   : > { %331 = vst [vmem:[%s497_s25 + $0x78] sm:$0xff] %v299_v14  ;;  %v273_v24 = vadd.f32 %v474_v1, %v234_v17  ;;  %v236_v25 = vmul.f32 %v464_v0, %v197_v13  ;;  %v300_v29 = vmax.f32 %v268_v18, 0.0  ;;  %v301_v30 = vmax.f32 %v269_v19, 0.0 }
  0x20   : > { %v302_v31 = vmax.f32 %v270_v20, 0.0  ;;  %v274_v32 = vadd.f32 %v474_v1, %v235_v21  ;;  %v303_v36 = vmax.f32 %v271_v22, 0.0  ;;  %v304_v37 = vmax.f32 %v272_v23, 0.0 }
  0x21   : > { %v305_v38 = vmax.f32 %v273_v24, 0.0  ;;  %v275_v39 = vadd.f32 %v474_v1, %v236_v25  ;;  %332 = vst [vmem:[%s497_s25 + $0x80] sm:$0xff] %v300_v29  ;;  %333 = vst [vmem:[%s497_s25 + $0x88] sm:$0xff] %v301_v30  ;;  %v237_v42 = vmul.f32 %v464_v0, %v198_v26  ;;  %v238_v43 = vmul.f32 %v464_v0, %v199_v27 }
  0x22   : > { %334 = vst [vmem:[%s497_s25 + $0x90] sm:$0xff] %v302_v31  ;;  %v306_v41 = vmax.f32 %v274_v32, 0.0  ;;  %v239_v44 = vmul.f32 %v464_v0, %v200_v28  ;;  %335 = vst [vmem:[%s497_s25 + $0x98] sm:$0xff] %v303_v36  ;;  %v240_v47 = vmul.f32 %v464_v0, %v201_v33  ;;  %v241_v48 = vmul.f32 %v464_v0, %v202_v34 }
  0x23   : > { %336 = vst [vmem:[%s497_s25 + $0xa0] sm:$0xff] %v304_v37  ;;  %337 = vst [vmem:[%s497_s25 + $0xa8] sm:$0xff] %v305_v38  ;;  %v307_v46 = vmax.f32 %v275_v39, 0.0  ;;  %v242_v49 = vmul.f32 %v464_v0, %v203_v35  ;;  %v276_v50 = vadd.f32 %v474_v1, %v237_v42  ;;  %v277_v51 = vadd.f32 %v474_v1, %v238_v43 }
  0x24   : > { %338 = vst [vmem:[%s497_s25 + $0xb0] sm:$0xff] %v306_v41  ;;  %v278_v52 = vadd.f32 %v474_v1, %v239_v44  ;;  %v243_v53 = vmul.f32 %v464_v0, %v204_v40  ;;  %v279_v54 = vadd.f32 %v474_v1, %v240_v47  ;;  %v280_v55 = vadd.f32 %v474_v1, %v241_v48 }
  0x25   : > { %339 = vst [vmem:[%s497_s25 + $0xb8] sm:$0xff] %v307_v46  ;;  %v281_v56 = vadd.f32 %v474_v1, %v242_v49  ;;  %v244_v57 = vmul.f32 %v464_v0, %v205_v45  ;;  %v308_v58 = vmax.f32 %v276_v50, 0.0  ;;  %v309_v59 = vmax.f32 %v277_v51, 0.0 }
  0x26   : > { %v310_v60 = vmax.f32 %v278_v52, 0.0  ;;  %v282_v61 = vadd.f32 %v474_v1, %v243_v53  ;;  %v311_v62 = vmax.f32 %v279_v54, 0.0  ;;  %v312_v63 = vmax.f32 %v280_v55, 0.0 }
  0x27   : > { %v313_v2 = vmax.f32 %v281_v56, 0.0  ;;  %v283_v3 = vadd.f32 %v474_v1, %v244_v57  ;;  %340 = vst [vmem:[%s497_s25 + $0xc0] sm:$0xff] %v308_v58  ;;  %341 = vst [vmem:[%s497_s25 + $0xc8] sm:$0xff] %v309_v59 }
  0x28   : > { %342 = vst [vmem:[%s497_s25 + $0xd0] sm:$0xff] %v310_v60  ;;  %v314_v4 = vmax.f32 %v282_v61, 0.0  ;;  %343 = vst [vmem:[%s497_s25 + $0xd8] sm:$0xff] %v311_v62 }
  0x29   : > { %344 = vst [vmem:[%s497_s25 + $0xe0] sm:$0xff] %v312_v63  ;;  %345 = vst [vmem:[%s497_s25 + $0xe8] sm:$0xff] %v313_v2  ;;  %v315_v0 = vmax.f32 %v283_v3, 0.0 }
  0x2a   : > { %346 = vst [vmem:[%s497_s25 + $0xf0] sm:$0xff] %v314_v4 }
  0x2b   : > { %347 = vst [vmem:[%s497_s25 + $0xf8] sm:$0xff] %v315_v0 }
  0x2c PF: > { %s13_s12 = sadd.s32 1, %s431_s12  }
  0x2d   : > { %p10_p4 = scmp.ge.s32.totalorder %s13_s12, 10  }
  0x2f   :  { %12 = sbr.rel (!%p10_p4) target bundleno = 1 (0x1), region = 62 }

</bundles_post_ra>
